<compile_context>
chip_gen: v5e
topology: v5e:2x2
jax: 0.10.0
libtpu: 0.0.40
codegen_flags: <defaults>
</compile_context>

<pallas_src>
import jax
import jax.numpy as jnp
from jax import lax
from jax.experimental import pallas as pl
from jax.experimental.pallas import tpu as pltpu

INV_SCALE_FACTOR = 0.2
SCALE = 1.0 / INV_SCALE_FACTOR  # qk.div(0.2) == qk * 5.0 (within 1 ulp of torch's div)


def _softmax_last(s):
    # numerically-stable, EXACT softmax over the last axis (approx reciprocal was
    # the source of the previous correctness failure).
    m = jnp.max(s, axis=-1, keepdims=True)
    e = jnp.exp(s - m)
    return e / jnp.sum(e, axis=-1, keepdims=True)


def fused_attn_kernel(x1_ref, x2f_ref, x3_ref, o_ref):
    """Whole problem resident in VMEM (no grid).

    x1_ref : (B, D, L)   native x1 layout;  x1[b] == query^T == value^T of stage 1
    x2f_ref: (D, B*L)    x2 flattened (free reshape); x2f[:, b*L:(b+1)*L] == key^T
    x3_ref : (B, D, L)   native x3 layout;  x3[b] == (stage-2 key)^T
    o_ref  : (D, L*B)    lane-dense output slab: o[d, l*B + b] = v3[b, l, d].
                         Wrapper reshape (D, L*B) -> (D, L, B) is free (row-major),
                         so the module's v3.permute(2,1,0) is fully folded in here.
    """
    B, D, L = x1_ref.shape
    x2f = x2f_ref[...]                                     # (D, B*L)

    # Constant 0/1 lane-spread matrices: spread[b][l, l*B + b] = 1.  A tiny MXU
    # product with these interleaves the per-batch (D, L) results into the
    # (D, L*B) output slab exactly (1.0/0.0 weights -> no rounding).
    col = lax.broadcasted_iota(jnp.int32, (L, L * B), 1)
    tgt = lax.broadcasted_iota(jnp.int32, (L, L * B), 0) * B
    spread = [(col == tgt + b).astype(jnp.float32) for b in range(B)]

    out = jnp.zeros((D, L * B), dtype=jnp.float32)
    for b in range(B):                                     # B=2: static unroll
        qT = x1_ref[b]                                     # (D, L)
        kT = x2f[:, b * L:(b + 1) * L]                     # (D, L)
        k3T = x3_ref[b]                                    # (D, L)

        # ---- stage 1: two separate QK^T products (lane-aligned; no off-boundary
        #      concat/slice).  Contract dim 0 of both operands == q @ k^T.
        s1 = lax.dot_general(qT, kT, (((0,), (0,)), ((), ())),
                             preferred_element_type=jnp.float32) * SCALE   # (L, L)
        s2 = lax.dot_general(qT, qT, (((0,), (0,)), ((), ())),
                             preferred_element_type=jnp.float32) * SCALE   # (L, L)
        p1 = _softmax_last(s1)
        p2 = _softmax_last(s2)
        # TODO(synk): F.dropout(p=0.2, training=True) is stochastic; identity here.

        # ---- both P @ V products share V = q -> fused (2L, D) MXU push.
        #      Concat/split at row 16 is a clean 2-vreg sublane boundary (f32).
        p_cat = jnp.concatenate([p1, p2], axis=0)          # (2L, L)
        v_cat = lax.dot_general(p_cat, qT, (((1,), (1,)), ((), ())),
                                preferred_element_type=jnp.float32)        # (2L, D)
        v1, v2 = v_cat[:L], v_cat[L:]                      # (L, D) each

        # ---- stage 2: v3 = softmax(v1 @ x3p^T / ivf) @ v2 ; k3T is already x3p^T
        s3 = jnp.dot(v1, k3T, preferred_element_type=jnp.float32) * SCALE  # (L, L)
        p3 = _softmax_last(s3)
        # v3 in transposed form (no in-kernel transpose op):
        #   v3T[d, i] = sum_k v2[k, d] * p3[i, k]  == (p3 @ v2)^T
        v3T = lax.dot_general(v2, p3, (((0,), (1,)), ((), ())),
                              preferred_element_type=jnp.float32)          # (D, L)
        # interleave into output lanes: out[:, l*B + b] += v3T[:, l]
        out = out + jnp.dot(v3T, spread[b], preferred_element_type=jnp.float32)

    o_ref[...] = out.astype(o_ref.dtype)


def model_forward(x1, x2, x3):
    # x1: (B, A, C)=(B, D, L), x2: (A, B, C)=(D, B, L), x3: (B, A, C)=(B, D, L)
    B, D, L = x1.shape
    assert x2.shape == (D, B, L) and x3.shape == (B, D, L)

    # Free (row-major-preserving) reshape; NO transposes feed the kernel.
    x2f = x2.reshape(D, B * L)

    vmem = pl.BlockSpec(memory_space=pltpu.MemorySpace.VMEM)
    v3slab = pl.pallas_call(
        fused_attn_kernel,
        out_shape=jax.ShapeDtypeStruct((D, L * B), x1.dtype),
        in_specs=[vmem, vmem, vmem],      # whole arrays in VMEM; no grid/pipeline
        out_specs=vmem,
    )(x1, x2f, x3)

    # Row-major free reshape: v3slab[d, l*B + b] -> out[d, l, b]  (module's (D,L,B)).
    return v3slab.reshape(D, L, B)


def _reference(x1, x2, x3):
    # pure-JAX reference for correctness checking (mirrors the torch module)
    def sdpa(q, k, v):
        s = jnp.einsum("bqd,bkd->bqk", q, k) * SCALE
        p = jax.nn.softmax(s, axis=-1)
        return jnp.einsum("bqk,bkd->bqd", p, v)

    x1p = jnp.transpose(x1, (0, 2, 1))
    x2p = jnp.transpose(x2, (1, 2, 0))
    x3p = jnp.transpose(x3, (0, 2, 1))
    v1 = sdpa(x1p, x2p, x1p)
    v2 = sdpa(x1p, x1p, x1p)
    v3 = sdpa(v1, x3p, v2)
    return jnp.transpose(v3, (2, 1, 0))


if __name__ == "__main__":
    # Small consistent shapes: B=2 (batch), A=8 (feature D after permute), C=16 (seq L)
    B, A, C = 2, 8, 16
    key = jax.random.PRNGKey(0)
    k1, k2, k3 = jax.random.split(key, 3)
    x1 = jax.random.normal(k1, (B, A, C), dtype=jnp.float32)   # analog of (8,4,32)
    x2 = jax.random.normal(k2, (A, B, C), dtype=jnp.float32)   # analog of (32,4,8)
    x3 = jax.random.normal(k3, (B, A, C), dtype=jnp.float32)   # analog of (8,32,8)

    out = jax.jit(model_forward)(x1, x2, x3)
    jax.block_until_ready(out)

    ref = _reference(x1, x2, x3)
    assert out.shape == (A, C, B), out.shape
    err = float(jnp.max(jnp.abs(out - ref)))
    assert jnp.allclose(out, ref, atol=1e-4, rtol=1e-4), err

    print("KERNEL_OK")
</pallas_src>

<mosaic_0001>
module attributes {stable_mosaic.version = 11 : i64} {
  func.func @fused_attn_kernel(%arg0: memref<2x8x16xf32, #tpu.memory_space<vmem>>, %arg1: memref<8x32xf32, #tpu.memory_space<vmem>>, %arg2: memref<2x8x16xf32, #tpu.memory_space<vmem>>, %arg3: memref<8x32xf32, #tpu.memory_space<vmem>>) attributes {dimension_semantics = [], scalar_prefetch = 0 : i64, scratch_operands = 0 : i64, tpu.core_type = #tpu.core_type<tc>} {
    %c0 = arith.constant 0 : index
    %c0_0 = arith.constant 0 : index
    %0 = vector.load %arg1[%c0, %c0_0] : memref<8x32xf32, #tpu.memory_space<vmem>>, vector<8x32xf32>
    %1 = tpu.iota {dimensions = array<i32: 1>} : vector<16x32xi32>
    %2 = tpu.iota {dimensions = array<i32: 0>} : vector<16x32xi32>
    %c2_i32 = arith.constant 2 : i32
    %3 = vector.broadcast %c2_i32 : i32 to vector<16x32xi32>
    %4 = arith.muli %2, %3 : vector<16x32xi32>
    %c0_i32 = arith.constant 0 : i32
    %5 = vector.broadcast %c0_i32 : i32 to vector<16x32xi32>
    %6 = arith.addi %4, %5 : vector<16x32xi32>
    %7 = arith.cmpi eq, %1, %6 : vector<16x32xi32>
    %8 = arith.extui %7 : vector<16x32xi1> to vector<16x32xi32>
    %9 = arith.sitofp %8 : vector<16x32xi32> to vector<16x32xf32>
    %c1_i32 = arith.constant 1 : i32
    %10 = vector.broadcast %c1_i32 : i32 to vector<16x32xi32>
    %11 = arith.addi %4, %10 : vector<16x32xi32>
    %12 = arith.cmpi eq, %1, %11 : vector<16x32xi32>
    %13 = arith.extui %12 : vector<16x32xi1> to vector<16x32xi32>
    %14 = arith.sitofp %13 : vector<16x32xi32> to vector<16x32xf32>
    %cst = arith.constant 0.000000e+00 : f32
    %15 = vector.broadcast %cst : f32 to vector<8x32xf32>
    %c0_1 = arith.constant 0 : index
    %c0_2 = arith.constant 0 : index
    %c0_3 = arith.constant 0 : index
    %16 = vector.load %arg0[%c0_1, %c0_2, %c0_3] : memref<2x8x16xf32, #tpu.memory_space<vmem>>, vector<1x8x16xf32>
    %17 = vector.shape_cast %16 : vector<1x8x16xf32> to vector<8x16xf32>
    %18 = vector.extract_strided_slice %0 {offsets = [0, 0], sizes = [8, 16], strides = [1, 1]} : vector<8x32xf32> to vector<8x16xf32>
    %c0_4 = arith.constant 0 : index
    %c0_5 = arith.constant 0 : index
    %c0_6 = arith.constant 0 : index
    %19 = vector.load %arg2[%c0_4, %c0_5, %c0_6] : memref<2x8x16xf32, #tpu.memory_space<vmem>>, vector<1x8x16xf32>
    %20 = vector.shape_cast %19 : vector<1x8x16xf32> to vector<8x16xf32>
    %cst_7 = arith.constant dense<0.000000e+00> : vector<16x16xf32>
    %21 = tpu.matmul %17, %18, %cst_7 {dimension_numbers = #tpu.dot_dimension_numbers<[0], [0], [1], [1], [0, 1, 1, 1], [], []>} : vector<8x16xf32>, vector<8x16xf32>, vector<16x16xf32> -> vector<16x16xf32>
    %cst_8 = arith.constant 5.000000e+00 : f32
    %22 = vector.broadcast %cst_8 : f32 to vector<16x16xf32>
    %23 = arith.mulf %21, %22 : vector<16x16xf32>
    %cst_9 = arith.constant dense<0.000000e+00> : vector<16x16xf32>
    %24 = tpu.matmul %17, %17, %cst_9 {dimension_numbers = #tpu.dot_dimension_numbers<[0], [0], [1], [1], [0, 1, 1, 1], [], []>} : vector<8x16xf32>, vector<8x16xf32>, vector<16x16xf32> -> vector<16x16xf32>
    %cst_10 = arith.constant 5.000000e+00 : f32
    %25 = vector.broadcast %cst_10 : f32 to vector<16x16xf32>
    %26 = arith.mulf %24, %25 : vector<16x16xf32>
    %cst_11 = arith.constant dense<0xFF800000> : vector<16xf32>
    %27 = vector.multi_reduction <maximumf>, %23, %cst_11 [1] : vector<16x16xf32> to vector<16xf32>
    %28 = vector.shape_cast %27 : vector<16xf32> to vector<16x1xf32>
    %29 = vector.broadcast %28 : vector<16x1xf32> to vector<16x16xf32>
    %30 = arith.subf %23, %29 : vector<16x16xf32>
    %31 = math.exp %30 : vector<16x16xf32>
    %cst_12 = arith.constant dense<0.000000e+00> : vector<16xf32>
    %32 = vector.multi_reduction <add>, %31, %cst_12 [1] : vector<16x16xf32> to vector<16xf32>
    %33 = vector.shape_cast %32 : vector<16xf32> to vector<16x1xf32>
    %34 = vector.broadcast %33 : vector<16x1xf32> to vector<16x16xf32>
    %35 = arith.divf %31, %34 : vector<16x16xf32>
    %cst_13 = arith.constant dense<0xFF800000> : vector<16xf32>
    %36 = vector.multi_reduction <maximumf>, %26, %cst_13 [1] : vector<16x16xf32> to vector<16xf32>
    %37 = vector.shape_cast %36 : vector<16xf32> to vector<16x1xf32>
    %38 = vector.broadcast %37 : vector<16x1xf32> to vector<16x16xf32>
    %39 = arith.subf %26, %38 : vector<16x16xf32>
    %40 = math.exp %39 : vector<16x16xf32>
    %cst_14 = arith.constant dense<0.000000e+00> : vector<16xf32>
    %41 = vector.multi_reduction <add>, %40, %cst_14 [1] : vector<16x16xf32> to vector<16xf32>
    %42 = vector.shape_cast %41 : vector<16xf32> to vector<16x1xf32>
    %43 = vector.broadcast %42 : vector<16x1xf32> to vector<16x16xf32>
    %44 = arith.divf %40, %43 : vector<16x16xf32>
    %45 = tpu.concatenate %35, %44 in 0 : vector<16x16xf32>, vector<16x16xf32> -> vector<32x16xf32>
    %cst_15 = arith.constant dense<0.000000e+00> : vector<32x8xf32>
    %46 = tpu.matmul %45, %17, %cst_15 {dimension_numbers = #tpu.dot_dimension_numbers<[1], [1], [0], [0], [0, 0, 1, 0], [], []>} : vector<32x16xf32>, vector<8x16xf32>, vector<32x8xf32> -> vector<32x8xf32>
    %47 = vector.extract_strided_slice %46 {offsets = [0, 0], sizes = [16, 8], strides = [1, 1]} : vector<32x8xf32> to vector<16x8xf32>
    %48 = vector.extract_strided_slice %46 {offsets = [16, 0], sizes = [16, 8], strides = [1, 1]} : vector<32x8xf32> to vector<16x8xf32>
    %cst_16 = arith.constant dense<0.000000e+00> : vector<16x16xf32>
    %49 = tpu.matmul %47, %20, %cst_16 {dimension_numbers = #tpu.dot_dimension_numbers<[1], [0], [0], [1], [0, 0, 1, 1], [], []>} : vector<16x8xf32>, vector<8x16xf32>, vector<16x16xf32> -> vector<16x16xf32>
    %cst_17 = arith.constant 5.000000e+00 : f32
    %50 = vector.broadcast %cst_17 : f32 to vector<16x16xf32>
    %51 = arith.mulf %49, %50 : vector<16x16xf32>
    %cst_18 = arith.constant dense<0xFF800000> : vector<16xf32>
    %52 = vector.multi_reduction <maximumf>, %51, %cst_18 [1] : vector<16x16xf32> to vector<16xf32>
    %53 = vector.shape_cast %52 : vector<16xf32> to vector<16x1xf32>
    %54 = vector.broadcast %53 : vector<16x1xf32> to vector<16x16xf32>
    %55 = arith.subf %51, %54 : vector<16x16xf32>
    %56 = math.exp %55 : vector<16x16xf32>
    %cst_19 = arith.constant dense<0.000000e+00> : vector<16xf32>
    %57 = vector.multi_reduction <add>, %56, %cst_19 [1] : vector<16x16xf32> to vector<16xf32>
    %58 = vector.shape_cast %57 : vector<16xf32> to vector<16x1xf32>
    %59 = vector.broadcast %58 : vector<16x1xf32> to vector<16x16xf32>
    %60 = arith.divf %56, %59 : vector<16x16xf32>
    %cst_20 = arith.constant dense<0.000000e+00> : vector<8x16xf32>
    %61 = tpu.matmul %48, %60, %cst_20 {dimension_numbers = #tpu.dot_dimension_numbers<[0], [1], [1], [0], [0, 1, 1, 0], [], []>} : vector<16x8xf32>, vector<16x16xf32>, vector<8x16xf32> -> vector<8x16xf32>
    %cst_21 = arith.constant dense<0.000000e+00> : vector<8x32xf32>
    %62 = tpu.matmul %61, %9, %cst_21 {dimension_numbers = #tpu.dot_dimension_numbers<[1], [0], [0], [1], [0, 0, 1, 1], [], []>} : vector<8x16xf32>, vector<16x32xf32>, vector<8x32xf32> -> vector<8x32xf32>
    %63 = arith.addf %15, %62 : vector<8x32xf32>
    %c1 = arith.constant 1 : index
    %c0_22 = arith.constant 0 : index
    %c0_23 = arith.constant 0 : index
    %64 = vector.load %arg0[%c1, %c0_22, %c0_23] : memref<2x8x16xf32, #tpu.memory_space<vmem>>, vector<1x8x16xf32>
    %65 = vector.shape_cast %64 : vector<1x8x16xf32> to vector<8x16xf32>
    %66 = vector.extract_strided_slice %0 {offsets = [0, 16], sizes = [8, 16], strides = [1, 1]} : vector<8x32xf32> to vector<8x16xf32>
    %c1_24 = arith.constant 1 : index
    %c0_25 = arith.constant 0 : index
    %c0_26 = arith.constant 0 : index
    %67 = vector.load %arg2[%c1_24, %c0_25, %c0_26] : memref<2x8x16xf32, #tpu.memory_space<vmem>>, vector<1x8x16xf32>
    %68 = vector.shape_cast %67 : vector<1x8x16xf32> to vector<8x16xf32>
    %cst_27 = arith.constant dense<0.000000e+00> : vector<16x16xf32>
    %69 = tpu.matmul %65, %66, %cst_27 {dimension_numbers = #tpu.dot_dimension_numbers<[0], [0], [1], [1], [0, 1, 1, 1], [], []>} : vector<8x16xf32>, vector<8x16xf32>, vector<16x16xf32> -> vector<16x16xf32>
    %cst_28 = arith.constant 5.000000e+00 : f32
    %70 = vector.broadcast %cst_28 : f32 to vector<16x16xf32>
    %71 = arith.mulf %69, %70 : vector<16x16xf32>
    %cst_29 = arith.constant dense<0.000000e+00> : vector<16x16xf32>
    %72 = tpu.matmul %65, %65, %cst_29 {dimension_numbers = #tpu.dot_dimension_numbers<[0], [0], [1], [1], [0, 1, 1, 1], [], []>} : vector<8x16xf32>, vector<8x16xf32>, vector<16x16xf32> -> vector<16x16xf32>
    %cst_30 = arith.constant 5.000000e+00 : f32
    %73 = vector.broadcast %cst_30 : f32 to vector<16x16xf32>
    %74 = arith.mulf %72, %73 : vector<16x16xf32>
    %cst_31 = arith.constant dense<0xFF800000> : vector<16xf32>
    %75 = vector.multi_reduction <maximumf>, %71, %cst_31 [1] : vector<16x16xf32> to vector<16xf32>
    %76 = vector.shape_cast %75 : vector<16xf32> to vector<16x1xf32>
    %77 = vector.broadcast %76 : vector<16x1xf32> to vector<16x16xf32>
    %78 = arith.subf %71, %77 : vector<16x16xf32>
    %79 = math.exp %78 : vector<16x16xf32>
    %cst_32 = arith.constant dense<0.000000e+00> : vector<16xf32>
    %80 = vector.multi_reduction <add>, %79, %cst_32 [1] : vector<16x16xf32> to vector<16xf32>
    %81 = vector.shape_cast %80 : vector<16xf32> to vector<16x1xf32>
    %82 = vector.broadcast %81 : vector<16x1xf32> to vector<16x16xf32>
    %83 = arith.divf %79, %82 : vector<16x16xf32>
    %cst_33 = arith.constant dense<0xFF800000> : vector<16xf32>
    %84 = vector.multi_reduction <maximumf>, %74, %cst_33 [1] : vector<16x16xf32> to vector<16xf32>
    %85 = vector.shape_cast %84 : vector<16xf32> to vector<16x1xf32>
    %86 = vector.broadcast %85 : vector<16x1xf32> to vector<16x16xf32>
    %87 = arith.subf %74, %86 : vector<16x16xf32>
    %88 = math.exp %87 : vector<16x16xf32>
    %cst_34 = arith.constant dense<0.000000e+00> : vector<16xf32>
    %89 = vector.multi_reduction <add>, %88, %cst_34 [1] : vector<16x16xf32> to vector<16xf32>
    %90 = vector.shape_cast %89 : vector<16xf32> to vector<16x1xf32>
    %91 = vector.broadcast %90 : vector<16x1xf32> to vector<16x16xf32>
    %92 = arith.divf %88, %91 : vector<16x16xf32>
    %93 = tpu.concatenate %83, %92 in 0 : vector<16x16xf32>, vector<16x16xf32> -> vector<32x16xf32>
    %cst_35 = arith.constant dense<0.000000e+00> : vector<32x8xf32>
    %94 = tpu.matmul %93, %65, %cst_35 {dimension_numbers = #tpu.dot_dimension_numbers<[1], [1], [0], [0], [0, 0, 1, 0], [], []>} : vector<32x16xf32>, vector<8x16xf32>, vector<32x8xf32> -> vector<32x8xf32>
    %95 = vector.extract_strided_slice %94 {offsets = [0, 0], sizes = [16, 8], strides = [1, 1]} : vector<32x8xf32> to vector<16x8xf32>
    %96 = vector.extract_strided_slice %94 {offsets = [16, 0], sizes = [16, 8], strides = [1, 1]} : vector<32x8xf32> to vector<16x8xf32>
    %cst_36 = arith.constant dense<0.000000e+00> : vector<16x16xf32>
    %97 = tpu.matmul %95, %68, %cst_36 {dimension_numbers = #tpu.dot_dimension_numbers<[1], [0], [0], [1], [0, 0, 1, 1], [], []>} : vector<16x8xf32>, vector<8x16xf32>, vector<16x16xf32> -> vector<16x16xf32>
    %cst_37 = arith.constant 5.000000e+00 : f32
    %98 = vector.broadcast %cst_37 : f32 to vector<16x16xf32>
    %99 = arith.mulf %97, %98 : vector<16x16xf32>
    %cst_38 = arith.constant dense<0xFF800000> : vector<16xf32>
    %100 = vector.multi_reduction <maximumf>, %99, %cst_38 [1] : vector<16x16xf32> to vector<16xf32>
    %101 = vector.shape_cast %100 : vector<16xf32> to vector<16x1xf32>
    %102 = vector.broadcast %101 : vector<16x1xf32> to vector<16x16xf32>
    %103 = arith.subf %99, %102 : vector<16x16xf32>
    %104 = math.exp %103 : vector<16x16xf32>
    %cst_39 = arith.constant dense<0.000000e+00> : vector<16xf32>
    %105 = vector.multi_reduction <add>, %104, %cst_39 [1] : vector<16x16xf32> to vector<16xf32>
    %106 = vector.shape_cast %105 : vector<16xf32> to vector<16x1xf32>
    %107 = vector.broadcast %106 : vector<16x1xf32> to vector<16x16xf32>
    %108 = arith.divf %104, %107 : vector<16x16xf32>
    %cst_40 = arith.constant dense<0.000000e+00> : vector<8x16xf32>
    %109 = tpu.matmul %96, %108, %cst_40 {dimension_numbers = #tpu.dot_dimension_numbers<[0], [1], [1], [0], [0, 1, 1, 0], [], []>} : vector<16x8xf32>, vector<16x16xf32>, vector<8x16xf32> -> vector<8x16xf32>
    %cst_41 = arith.constant dense<0.000000e+00> : vector<8x32xf32>
    %110 = tpu.matmul %109, %14, %cst_41 {dimension_numbers = #tpu.dot_dimension_numbers<[1], [0], [0], [1], [0, 0, 1, 1], [], []>} : vector<8x16xf32>, vector<16x32xf32>, vector<8x32xf32> -> vector<8x32xf32>
    %111 = arith.addf %63, %110 : vector<8x32xf32>
    %c0_42 = arith.constant 0 : index
    %c0_43 = arith.constant 0 : index
    %112 = vector.load %arg3[%c0_42, %c0_43] : memref<8x32xf32, #tpu.memory_space<vmem>>, vector<8x32xf32>
    tpu.vector_store %arg3[%c0_42, %c0_43], %111 {strides = array<i32>} : memref<8x32xf32, #tpu.memory_space<vmem>>, vector<8x32xf32>,
    return
  }
}

</mosaic_0001>

<bundles_post_ra>
// kernel: model_forward.1
= control target key start
LH: loop header
LB: loop body
LE: loop exit
PB: predicated region body
PF: predicated region fallthrough
CT: control target
= control target key end

     0   :  { %8 = vsyncpa [#allocation3], 0  ;;  %s973_s15 = smov [#allocation2]   ;;  %s974_s17 = smov 128   ;;  %s1108_s0 = inlined_call_operand.vmem [shape: f32[2,8,16], index: 0, kind: input, shape index: {}]   ;;  %s1109_s1 = inlined_call_operand.vmem [shape: f32[8,32], index: 1, kind: input, shape index: {}]   ;;  %s1110_s2 = inlined_call_operand.hbm [shape: f32[2,8,16], index: 2, kind: input, shape index: {}]   ;;  %s1111_s3 = inlined_call_operand.vmem [shape: f32[8,32], index: 3, kind: output, shape index: {}]  }
   0x1   :  { %s17_s14 = sshll.u32 %s1110_s2, 4  ;;  %s19_s16 = sshll.u32 %s973_s15, 4  ;;  %s18_s14 = int_to_ptr.hbm [resolvable:$true] %s17_s14  ;;  %s20_s16 = int_to_ptr.vmem [resolvable:$true] %s19_s16 }
   0x2   :  { %s975_s18 = smov 8  }
   0x3   :  { %25 = dma.hbm_to_vmem [thread:$0]  %s18_s14, 256, %s20_s16, [#allocation3], %s974_s17, %s974_s17, %s975_s18  }
   0x4   :  { %971 = dma.done.wait [#allocation3], 256  }
   0x5   :  { %972 = vsyncadd [#allocation3], 4294967040  ;;  %v52_v0 = vld [vmem:[%s1108_s0] sm:$0xff]  ;;  %vm86_vm0 = vcmask 64512   ;;  %vm143_vm1 = vcmask 130048   ;;  %v1021_v26 = vld [vmem:[%s1108_s0 + $0x8] sm:$0xff] }
   0x6   :  { %54 = vxpose.xlu0.b32.start.end [1/1] (short) (narrow) %v52_v0, 16  ;;  %133 = vmatpush.msra.mxu1 %v52_v0  ;;  %v30_v1 = vld [vmem:[%s1109_s1] sm:$0xff]  ;;  %s976_s1 = smov 112  }
   0x7   :  { %108 = vmatpush.msra.mxu0 %v30_v1  ;;  %892 = vmatpush.msra.mxu2 %v30_v1  ;;  %v53_v62 = vld [vmem:[#allocation2] sm:$0xff] }
   0x8   :  { %305 = vmatpush.msra.mxu3 %v53_v62 }
   0x9   :  { %861 = vmatpush.xpose.msk.msrb.mxu2 %vm143_vm1, %v52_v0 }
   0xa   :  { %510 = vmatpush.msrb.mxu3 %v1021_v26 }
  0xaa   :  { %v70_v2 = vpop.trf.xlu0 }
  0xab   :  { %857 = vmatmul.msk.f32.vlgmr.msra.gmra.mxu0 %vm86_vm0, %v70_v2  ;;  %859 = vmatmul.msk.f32.vlgmr.msra.gmra.mxu1 %vm86_vm0, %v70_v2 }
  0xb2   :  { %v71_v3 = vpop.trf.xlu0 }
  0xb3   :  { %858 = vmatmul.msk.f32.vlgmr.msra.gmra.mxu2 %vm86_vm0, %v71_v3  ;;  %860 = vmatmul.msk.f32.gmra.mxu1 %vm86_vm0, %v71_v3 }
 0x128   :  { %v110_v4 = vpop.f32.mrf.mxu0  ;;  %v135_v14 = vpop.f32.mrf.mxu1 }
 0x129   :  { %v116_v5 = vmul.f32 5.0, %v110_v4  ;;  %v141_v18 = vmul.f32 5.0, %v135_v14 }
 0x12b   :  { %v144_v6 = vsel %vm143_vm1, %v116_v5, -inf  ;;  %v192_v20 = vsel %vm143_vm1, %v141_v18, -inf }
 0x12c   :  { %145 = vmax.xlane.f32.xlu0 %v144_v6 }
 0x130   :  { %v138_v21 = vpop.f32.mrf.mxu1 }
 0x131   :  { %v142_v22 = vmul.f32 5.0, %v138_v21 }
 0x133   :  { %v195_v25 = vsel %vm143_vm1, %v142_v22, -inf }
 0x136   :  { %v113_v7 = vpop.f32.mrf.mxu2 }
 0x137   :  { %v117_v8 = vmul.f32 5.0, %v113_v7 }
 0x139   :  { %v147_v9 = vsel %vm143_vm1, %v117_v8, -inf }
 0x13a   :  { %148 = vmax.xlane.f32.xlu1 %v147_v9 }
 0x19f   :  { %v146_v10 = vpop.xlane.xlu0 %145 }
 0x1a0   :  { %v150_v11 = vsub.f32 %v116_v5, %v146_v10 }
 0x1a2   :  { %v152_v12 = vmul.f32 1.442695, %v150_v11 }
 0x1a4   :  { %899 = vpow2.f32 %v152_v12 }
 0x1aa   :  { %v900_v13 = vpop.eup %899 }
 0x1ab   :  { %v156_v15 = vsel %vm143_vm1, %v900_v13, 0.0 }
 0x1ac   :  { %157 = vadd.xlane.f32.xlu1 %v156_v15 }
 0x1ad   :  { %v149_v16 = vpop.xlane.xlu1 %148 }
 0x1ae   :  { %v151_v17 = vsub.f32 %v117_v8, %v149_v16 }
 0x1b0   :  { %v154_v19 = vmul.f32 1.442695, %v151_v17 }
 0x1b2   :  { %901 = vpow2.f32 %v154_v19 }
 0x1b4   :  { %193 = vmax.xlane.f32.xlu1 %v192_v20 }
 0x1b8   :  { %v902_v23 = vpop.eup %901 }
 0x1b9   :  { %v159_v24 = vsel %vm143_vm1, %v902_v23, 0.0 }
 0x1ba   :  { %160 = vadd.xlane.f32.xlu2 %v159_v24 }
 0x1bc   :  { %196 = vmax.xlane.f32.xlu1 %v195_v25 }
 0x1d2   :  { %461 = vrot.lane.b32.xlu2 %v30_v1, %s976_s1 }
 0x1f6   :  { %428 = vxpose.xlu1.b32.start.end [1/1] (short) (narrow) %v1021_v26, 16 }
 0x21f   :  { %v158_v27 = vpop.xlane.xlu1 %157 }
 0x220   :  { %903 = vrcp.f32 %v158_v27  ;;  %v173_v33 = vand.u32 2147483648, %v158_v27  ;;  %v171_v36 = vand.u32 2147483647, %v158_v27  ;;  %vm167_vm3 = vweird.f32 %v158_v27 }
 0x222   :  { %v174_v39 = vor.u32 1.1754944e-38, %v173_v33  ;;  %vm172_vm5 = vcmp.eq.f32.partialorder %v171_v36, 8.507059e+37 }
 0x226   :  { %v904_v28 = vpop.eup %903 }
 0x227   :  { %v163_v29 = vmul.f32 %v904_v28, %v158_v27  ;;  %v194_v30 = vpop.xlane.xlu1 %193  ;;  %vm168_vm2 = vweird.f32 %v904_v28 }
 0x228   :  { %v198_v31 = vsub.f32 %v141_v18, %v194_v30  ;;  %vm169_vm4 = vmor %vm167_vm3, %vm168_vm2 }
 0x229   :  { %v164_v32 = vsub.f32 1.0, %v163_v29 }
 0x22a   :  { %v200_v34 = vmul.f32 1.442695, %v198_v31 }
 0x22b   :  { %v165_v35 = vmul.f32 %v904_v28, %v164_v32 }
 0x22c   :  { %905 = vpow2.f32 %v200_v34 }
 0x22d   :  { %v166_v37 = vadd.f32 %v904_v28, %v165_v35  ;;  %v161_v38 = vpop.xlane.xlu2 %160 }
 0x22e   :  { %907 = vrcp.f32 %v161_v38  ;;  %v188_v52 = vand.u32 2147483648, %v161_v38  ;;  %v186_v54 = vand.u32 2147483647, %v161_v38  ;;  %vm182_vm7 = vweird.f32 %v161_v38 }
 0x22f   :  { %v197_v40 = vpop.xlane.xlu1 %196  ;;  %v170_v41 = vsel %vm169_vm4, %v904_v28, %v166_v37 }
 0x230   :  { %v199_v42 = vsub.f32 %v142_v22, %v197_v40  ;;  %v175_v43 = vsel %vm172_vm5, %v174_v39, %v170_v41  ;;  %v189_v58 = vor.u32 1.1754944e-38, %v188_v52  ;;  %vm187_vm9 = vcmp.eq.f32.partialorder %v186_v54, 8.507059e+37 }
 0x231   :  { %v176_v44 = vmul.f32 %v900_v13, %v175_v43 }
 0x232   :  { %v906_v45 = vpop.eup %905  ;;  %v202_v46 = vmul.f32 1.442695, %v199_v42 }
 0x233   :  { %862 = vmatmul.msk.f32.vlgmr.msrb.gmra.mxu2 %vm143_vm1, %v176_v44  ;;  %v204_v47 = vsel %vm143_vm1, %v906_v45, 0.0 }
 0x234   :  { %v908_v48 = vpop.eup %907  ;;  %909 = vpow2.f32 %v202_v46  ;;  %205 = vadd.xlane.f32.xlu2 %v204_v47 }
 0x235   :  { %v178_v49 = vmul.f32 %v908_v48, %v161_v38  ;;  %v462_v50 = vpop.permute.xlu2 %461  ;;  %vm183_vm6 = vweird.f32 %v908_v48 }
 0x236   :  { %485 = vmatpush.msrb.mxu1 %v462_v50  ;;  %vm184_vm8 = vmor %vm182_vm7, %vm183_vm6 }
 0x237   :  { %v179_v51 = vsub.f32 1.0, %v178_v49 }
 0x239   :  { %v180_v53 = vmul.f32 %v908_v48, %v179_v51 }
 0x23a   :  { %v910_v55 = vpop.eup %909 }
 0x23b   :  { %v207_v56 = vsel %vm143_vm1, %v910_v55, 0.0  ;;  %v181_v57 = vadd.f32 %v908_v48, %v180_v53 }
 0x23c   :  { %208 = vadd.xlane.f32.xlu2 %v207_v56 }
 0x23d   :  { %v185_v59 = vsel %vm184_vm8, %v908_v48, %v181_v57 }
 0x23e   :  { %v190_v60 = vsel %vm187_vm9, %v189_v58, %v185_v59 }
 0x23f   :  { %v191_v61 = vmul.f32 %v902_v23, %v190_v60 }
 0x241   :  { %863 = vmatmul.msk.f32.gmra.mxu2 %vm143_vm1, %v191_v61 }
 0x29a   :  { %v444_v63 = vpop.trf.xlu1 }
 0x29b   :  { %872 = vmatmul.msk.f32.vlgmr.msrb.gmra.mxu1 %vm86_vm0, %v444_v63 }
 0x2a2   :  { %v445_v0 = vpop.trf.xlu1 }
 0x2a3   :  { %873 = vmatmul.msk.f32.gmra.mxu1 %vm86_vm0, %v445_v0 }
 0x2a7   :  { %v206_v1 = vpop.xlane.xlu2 %205 }
 0x2a8   :  { %911 = vrcp.f32 %v206_v1  ;;  %v221_v6 = vand.u32 2147483648, %v206_v1  ;;  %v219_v8 = vand.u32 2147483647, %v206_v1  ;;  %vm215_vm11 = vweird.f32 %v206_v1 }
 0x2aa   :  { %v222_v11 = vor.u32 1.1754944e-38, %v221_v6  ;;  %vm220_vm13 = vcmp.eq.f32.partialorder %v219_v8, 8.507059e+37 }
 0x2ae   :  { %v912_v2 = vpop.eup %911 }
 0x2af   :  { %v211_v3 = vmul.f32 %v912_v2, %v206_v1  ;;  %v209_v4 = vpop.xlane.xlu2 %208  ;;  %vm216_vm10 = vweird.f32 %v912_v2 }
 0x2b0   :  { %913 = vrcp.f32 %v209_v4  ;;  %vm217_vm12 = vmor %vm215_vm11, %vm216_vm10  ;;  %v236_v18 = vand.u32 2147483648, %v209_v4  ;;  %v234_v20 = vand.u32 2147483647, %v209_v4  ;;  %vm230_vm15 = vweird.f32 %v209_v4 }
 0x2b1   :  { %v212_v5 = vsub.f32 1.0, %v211_v3 }
 0x2b2   :  { %v237_v22 = vor.u32 1.1754944e-38, %v236_v18  ;;  %vm235_vm3 = vcmp.eq.f32.partialorder %v234_v20, 8.507059e+37 }
 0x2b3   :  { %v213_v7 = vmul.f32 %v912_v2, %v212_v5 }
 0x2b5   :  { %v214_v9 = vadd.f32 %v912_v2, %v213_v7 }
 0x2b6   :  { %v914_v10 = vpop.eup %913  ;;  %v272_v12 = vpop.f32.mrf.mxu2 }
 0x2b7   :  { %v226_v13 = vmul.f32 %v914_v10, %v209_v4  ;;  %866 = vmatmul.msk.f32.vlgmr.msra.gmra.mxu3 %vm86_vm0, %v272_v12  ;;  %v218_v14 = vsel %vm217_vm12, %v912_v2, %v214_v9  ;;  %vm231_vm14 = vweird.f32 %v914_v10 }
 0x2b8   :  { %v223_v15 = vsel %vm220_vm13, %v222_v11, %v218_v14  ;;  %vm232_vm2 = vmor %vm230_vm15, %vm231_vm14 }
 0x2b9   :  { %v227_v16 = vsub.f32 1.0, %v226_v13  ;;  %v224_v17 = vmul.f32 %v906_v45, %v223_v15 }
 0x2bb   :  { %v228_v19 = vmul.f32 %v914_v10, %v227_v16  ;;  %864 = vmatmul.msk.f32.gmra.mxu2 %vm143_vm1, %v224_v17 }
 0x2bd   :  { %v229_v21 = vadd.f32 %v914_v10, %v228_v19 }
 0x2bf   :  { %v233_v23 = vsel %vm232_vm2, %v914_v10, %v229_v21 }
 0x2c0   :  { %v238_v24 = vsel %vm235_vm3, %v237_v22, %v233_v23 }
 0x2c1   :  { %v239_v25 = vmul.f32 %v910_v55, %v238_v24 }
 0x2c3   :  { %865 = vmatmul.msk.f32.gmra.mxu2 %vm143_vm1, %v239_v25 }
 0x2c4   :  { %v275_v27 = vpop.f32.mrf.mxu2 }
 0x2c5   :  { %867 = vmatmul.msk.f32.gmra.mxu3 %vm86_vm0, %v275_v27 }
 0x2cd   :  { %874 = vmatmul.msk.f32.vlgmr.msrb.gmra.mxu3 %vm86_vm0, %v444_v63 }
 0x2d5   :  { %875 = vmatmul.msk.f32.gmra.mxu3 %vm86_vm0, %v445_v0 }
 0x318   :  { %v487_v28 = vpop.f32.mrf.mxu1 }
 0x319   :  { %v493_v29 = vmul.f32 5.0, %v487_v28 }
 0x31b   :  { %v520_v30 = vsel %vm143_vm1, %v493_v29, -inf }
 0x31c   :  { %521 = vmax.xlane.f32.xlu1 %v520_v30 }
 0x320   :  { %v490_v36 = vpop.f32.mrf.mxu1 }
 0x321   :  { %v494_v38 = vmul.f32 5.0, %v490_v36 }
 0x323   :  { %v523_v39 = vsel %vm143_vm1, %v494_v38, -inf }
 0x33a   :  { %v307_v31 = vpop.f32.mrf.mxu3 }
 0x33b   :  { %v313_v35 = vmul.f32 5.0, %v307_v31 }
 0x33d   :  { %v315_v37 = vsel %vm143_vm1, %v313_v35, -inf }
 0x33e   :  { %v278_v2 = vpop.f32.mrf.mxu2 }
 0x346   :  { %v281_v3 = vpop.f32.mrf.mxu2 }
 0x348   :  { %v310_v32 = vpop.f32.mrf.mxu3 }
 0x349   :  { %v314_v33 = vmul.f32 5.0, %v310_v32 }
 0x34b   :  { %v318_v34 = vsel %vm143_vm1, %v314_v33, -inf }
 0x34c   :  { %319 = vmax.xlane.f32.xlu2 %v318_v34 }
 0x350   :  { %v512_v58 = vpop.f32.mrf.mxu3 }
 0x351   :  { %v518_v59 = vmul.f32 5.0, %v512_v58 }
 0x353   :  { %v568_v61 = vsel %vm143_vm1, %v518_v59, -inf }
 0x354   :  { %316 = vmax.xlane.f32.xlu2 %v315_v37 }
 0x358   :  { %v515_v63 = vpop.f32.mrf.mxu3 }
 0x359   :  { %v519_v0 = vmul.f32 5.0, %v515_v63 }
 0x35b   :  { %v571_v1 = vsel %vm143_vm1, %v519_v0, -inf }
 0x35c   :  { %524 = vmax.xlane.f32.xlu2 %v523_v39 }
 0x38f   :  { %v522_v46 = vpop.xlane.xlu1 %521 }
 0x390   :  { %v526_v50 = vsub.f32 %v493_v29, %v522_v46 }
 0x392   :  { %v528_v53 = vmul.f32 1.442695, %v526_v50 }
 0x3bf   :  { %v320_v40 = vpop.xlane.xlu2 %319 }
 0x3c0   :  { %v322_v43 = vsub.f32 %v314_v33, %v320_v40 }
 0x3c2   :  { %v325_v45 = vmul.f32 1.442695, %v322_v43 }
 0x3c7   :  { %v317_v41 = vpop.xlane.xlu2 %316 }
 0x3c8   :  { %v321_v42 = vsub.f32 %v313_v35, %v317_v41 }
 0x3ca   :  { %v323_v44 = vmul.f32 1.442695, %v321_v42 }
 0x3cc   :  { %915 = vpow2.f32 %v323_v44 }
 0x3cd   :  { %917 = vpow2.f32 %v325_v45 }
 0x3cf   :  { %v525_v47 = vpop.xlane.xlu2 %524 }
 0x3d0   :  { %v527_v48 = vsub.f32 %v494_v38, %v525_v47 }
 0x3d2   :  { %v1041_v49 = vpop.eup %915  ;;  %v530_v51 = vmul.f32 1.442695, %v527_v48 }
 0x3d3   :  { %v327_v52 = vsel %vm143_vm1, %v1041_v49, 0.0  ;;  %v918_v54 = vpop.eup %917 }
 0x3d4   :  { %919 = vpow2.f32 %v530_v51  ;;  %328 = vadd.xlane.f32.xlu2 %v327_v52  ;;  %v330_v56 = vsel %vm143_vm1, %v918_v54, 0.0 }
 0x3d5   :  { %921 = vpow2.f32 %v528_v53 }
 0x3da   :  { %v1045_v55 = vpop.eup %919 }
 0x3db   :  { %v535_v57 = vsel %vm143_vm1, %v1045_v55, 0.0  ;;  %v1050_v60 = vpop.eup %921 }
 0x3dc   :  { %331 = vadd.xlane.f32.xlu2 %v330_v56  ;;  %536 = vadd.xlane.f32.xlu0 %v535_v57  ;;  %v532_v62 = vsel %vm143_vm1, %v1050_v60, 0.0 }
 0x3e4   :  { %569 = vmax.xlane.f32.xlu0 %v568_v61  ;;  %533 = vadd.xlane.f32.xlu2 %v532_v62 }
 0x3ec   :  { %572 = vmax.xlane.f32.xlu0 %v571_v1 }
 0x40d   :  { %363 = vxpose.xlu2.b32.start [1/2] (short) (narrow) %v278_v2, 8  ;;  %v427_v2 = vld [vmem:[#allocation2 + $0x8] sm:$0xff] }
 0x40e   :  { %681 = vmatpush.msra.mxu1 %v427_v2 }
 0x415   :  { %364 = vxpose.xlu2.b32.end [2/2] (short) (narrow) %v281_v3, 8 }
 0x447   :  { %v329_v4 = vpop.xlane.xlu2 %328 }
 0x448   :  { %923 = vrcp.f32 %v329_v4  ;;  %vm338_vm6 = vweird.f32 %v329_v4  ;;  %v344_v21 = vand.u32 2147483648, %v329_v4  ;;  %v342_v24 = vand.u32 2147483647, %v329_v4 }
 0x44a   :  { %v345_v31 = vor.u32 1.1754944e-38, %v344_v21  ;;  %vm343_vm11 = vcmp.eq.f32.partialorder %v342_v24, 8.507059e+37 }
 0x44e   :  { %v924_v5 = vpop.eup %923 }
 0x44f   :  { %v1056_v6 = vpop.xlane.xlu0 %536  ;;  %v332_v7 = vpop.xlane.xlu2 %331  ;;  %v334_v8 = vmul.f32 %v924_v5, %v329_v4  ;;  %vm339_vm4 = vweird.f32 %v924_v5 }
 0x450   :  { %925 = vrcp.f32 %v332_v7  ;;  %v359_v17 = vand.u32 2147483648, %v332_v7  ;;  %v357_v18 = vand.u32 2147483647, %v332_v7  ;;  %vm353_vm7 = vweird.f32 %v332_v7  ;;  %vm1058_vm8 = vmor %vm338_vm6, %vm339_vm4 }
 0x451   :  { %v335_v9 = vsub.f32 1.0, %v334_v8  ;;  %v564_v58 = vand.u32 2147483648, %v1056_v6  ;;  %vm558_vm3 = vweird.f32 %v1056_v6  ;;  %v562_v61 = vand.u32 2147483647, %v1056_v6 }
 0x452   :  { %v360_v25 = vor.u32 1.1754944e-38, %v359_v17  ;;  %vm358_vm10 = vcmp.eq.f32.partialorder %v357_v18, 8.507059e+37 }
 0x453   :  { %v336_v12 = vmul.f32 %v924_v5, %v335_v9  ;;  %v565_v63 = vor.u32 1.1754944e-38, %v564_v58 }
 0x455   :  { %v337_v20 = vadd.f32 %v924_v5, %v336_v12 }
 0x456   :  { %v926_v10 = vpop.eup %925 }
 0x457   :  { %v570_v11 = vpop.xlane.xlu0 %569  ;;  %v349_v13 = vmul.f32 %v926_v10, %v332_v7  ;;  %vm354_vm5 = vweird.f32 %v926_v10  ;;  %v341_v30 = vsel %vm1058_vm8, %v924_v5, %v337_v20  ;;  %v534_v41 = vpop.xlane.xlu2 %533 }
 0x458   :  { %v574_v14 = vsub.f32 %v518_v59, %v570_v11  ;;  %vm355_vm9 = vmor %vm353_vm7, %vm354_vm5  ;;  %v346_v37 = vsel %vm343_vm11, %v345_v31, %v341_v30  ;;  %vm543_vm13 = vweird.f32 %v534_v41  ;;  %v547_v50 = vand.u32 2147483647, %v534_v41 }
 0x459   :  { %v350_v15 = vsub.f32 1.0, %v349_v13  ;;  %v347_v38 = vmul.f32 %v1041_v49, %v346_v37  ;;  %vm563_vm5 = vcmp.eq.f32.partialorder %v562_v61, 8.507059e+37 }
 0x45a   :  { %v576_v16 = vmul.f32 1.442695, %v574_v14  ;;  %vm548_vm15 = vcmp.eq.f32.partialorder %v547_v50, 8.507059e+37 }
 0x45b   :  { %v351_v19 = vmul.f32 %v926_v10, %v350_v15 }
 0x45c   :  { %927 = vpow2.f32 %v576_v16 }
 0x45d   :  { %v352_v22 = vadd.f32 %v926_v10, %v351_v19 }
 0x45f   :  { %v573_v27 = vpop.xlane.xlu0 %572  ;;  %v356_v29 = vsel %vm355_vm9, %v926_v10, %v352_v22 }
 0x460   :  { %v575_v28 = vsub.f32 %v519_v0, %v573_v27  ;;  %v361_v32 = vsel %vm358_vm10, %v360_v25, %v356_v29 }
 0x461   :  { %v362_v35 = vmul.f32 %v918_v54, %v361_v32 }
 0x462   :  { %v1064_v33 = vpop.eup %927  ;;  %v578_v34 = vmul.f32 1.442695, %v575_v28 }
 0x463   :  { %v580_v36 = vsel %vm143_vm1, %v1064_v33, 0.0  ;;  %868 = vmatpush.xpose.msk.msrb.mxu0 %vm143_vm1, %v362_v35 }
 0x464   :  { %929 = vpow2.f32 %v578_v34  ;;  %581 = vadd.xlane.f32.xlu0 %v580_v36 }
 0x465   :  { %931 = vrcp.f32 %v534_v41 }
 0x466   :  { %933 = vrcp.f32 %v1056_v6 }
 0x467   :  { %869 = vmatpush.xpose.msk.msrb.mxu0 %vm143_vm1, %v347_v38 }
 0x46a   :  { %v1073_v39 = vpop.eup %929 }
 0x46b   :  { %876 = vmatpush.xpose.msk.msra.mxu0 %vm143_vm1, %v1021_v26  ;;  %v583_v40 = vsel %vm143_vm1, %v1073_v39, 0.0  ;;  %v932_v42 = vpop.eup %931  ;;  %v549_v26 = vand.u32 2147483648, %v534_v41 }
 0x46c   :  { %584 = vadd.xlane.f32.xlu0 %v583_v40  ;;  %v539_v43 = vmul.f32 %v932_v42, %v534_v41  ;;  %v934_v45 = vpop.eup %933  ;;  %vm544_vm12 = vweird.f32 %v932_v42 }
 0x46d   :  { %v554_v46 = vmul.f32 %v934_v45, %v1056_v6  ;;  %vm545_vm14 = vmor %vm543_vm13, %vm544_vm12  ;;  %v550_v54 = vor.u32 1.1754944e-38, %v549_v26  ;;  %vm559_vm2 = vweird.f32 %v934_v45 }
 0x46e   :  { %v540_v44 = vsub.f32 1.0, %v539_v43  ;;  %vm560_vm4 = vmor %vm558_vm3, %vm559_vm2 }
 0x46f   :  { %v555_v48 = vsub.f32 1.0, %v554_v46 }
 0x470   :  { %v541_v47 = vmul.f32 %v932_v42, %v540_v44 }
 0x471   :  { %v556_v52 = vmul.f32 %v934_v45, %v555_v48 }
 0x472   :  { %v542_v49 = vadd.f32 %v932_v42, %v541_v47 }
 0x473   :  { %v557_v57 = vadd.f32 %v934_v45, %v556_v52 }
 0x474   :  { %v546_v53 = vsel %vm545_vm14, %v932_v42, %v542_v49 }
 0x475   :  { %v551_v56 = vsel %vm548_vm15, %v550_v54, %v546_v53  ;;  %v561_v62 = vsel %vm560_vm4, %v934_v45, %v557_v57 }
 0x476   :  { %v552_v59 = vmul.f32 %v1050_v60, %v551_v56  ;;  %v566_v0 = vsel %vm563_vm5, %v565_v63, %v561_v62 }
 0x477   :  { %v567_v1 = vmul.f32 %v1045_v55, %v566_v0 }
 0x4a6   :  { %v379_v51 = vpop.trf.xlu2 }
 0x4a7   :  { %870 = vmatmul.msk.f32.vlgmr.msrb.gmra.mxu0 %vm143_vm1, %v379_v51 }
 0x4af   :  { %877 = vmatmul.msk.f32.vlgmr.msra.gmra.mxu0 %vm143_vm1, %v552_v59 }
 0x4b7   :  { %878 = vmatmul.msk.f32.gmra.mxu0 %vm143_vm1, %v567_v1 }
 0x4d7   :  { %v582_v3 = vpop.xlane.xlu0 %581 }
 0x4d8   :  { %935 = vrcp.f32 %v582_v3  ;;  %v597_v7 = vand.u32 2147483648, %v582_v3  ;;  %v595_v9 = vand.u32 2147483647, %v582_v3  ;;  %vm591_vm7 = vweird.f32 %v582_v3 }
 0x4da   :  { %v598_v12 = vor.u32 1.1754944e-38, %v597_v7  ;;  %vm596_vm9 = vcmp.eq.f32.partialorder %v595_v9, 8.507059e+37  ;;  %v31_v7 = vlaneseq }
 0x4dc   :  { %v32_v9 = vand.u32 127, %v31_v7 }
 0x4de   :  { %v936_v4 = vpop.eup %935 }
 0x4df   :  { %v587_v5 = vmul.f32 %v936_v4, %v582_v3  ;;  %v585_v60 = vpop.xlane.xlu0 %584  ;;  %vm592_vm6 = vweird.f32 %v936_v4 }
 0x4e0   :  { %937 = vrcp.f32 %v585_v60  ;;  %vm593_vm8 = vmor %vm591_vm7, %vm592_vm6  ;;  %v612_v17 = vand.u32 2147483648, %v585_v60  ;;  %v610_v19 = vand.u32 2147483647, %v585_v60  ;;  %vm606_vm11 = vweird.f32 %v585_v60 }
 0x4e1   :  { %v588_v6 = vsub.f32 1.0, %v587_v5 }
 0x4e2   :  { %v613_v21 = vor.u32 1.1754944e-38, %v612_v17  ;;  %vm611_vm13 = vcmp.eq.f32.partialorder %v610_v19, 8.507059e+37 }
 0x4e3   :  { %v589_v8 = vmul.f32 %v936_v4, %v588_v6 }
 0x4e5   :  { %v590_v10 = vadd.f32 %v936_v4, %v589_v8  ;;  %v34_v8 = vshrl.u32 %v31_v7, 7 }
 0x4e6   :  { %v938_v11 = vpop.eup %937 }
 0x4e7   :  { %v602_v55 = vmul.f32 %v938_v11, %v585_v60  ;;  %v594_v13 = vsel %vm593_vm8, %v936_v4, %v590_v10  ;;  %vm607_vm10 = vweird.f32 %v938_v11  ;;  %v35_v10 = vadd.s32 8, %v34_v8 }
 0x4e8   :  { %v599_v14 = vsel %vm596_vm9, %v598_v12, %v594_v13  ;;  %vm608_vm12 = vmor %vm606_vm11, %vm607_vm10  ;;  %vm846_vm11 = vcmask 261120  }
 0x4e9   :  { %v603_v15 = vsub.f32 1.0, %v602_v55  ;;  %v600_v16 = vmul.f32 %v1064_v33, %v599_v14  ;;  %v37_v12 = vmul.u32 2, %v35_v10  ;;  %v977_v55 = vmov 1.0  }
 0x4eb   :  { %v604_v18 = vmul.f32 %v938_v11, %v603_v15  ;;  %879 = vmatmul.msk.f32.gmra.mxu0 %vm143_vm1, %v600_v16  ;;  %vm39_vm7 = vcmp.eq.s32.totalorder %v32_v9, %v37_v12  ;;  %v45_v13 = vadd.s32 1, %v37_v12 }
 0x4ed   :  { %v605_v20 = vadd.f32 %v938_v11, %v604_v18  ;;  %vm47_vm9 = vcmp.eq.s32.totalorder %v32_v9, %v45_v13 }
 0x4ee   :  { %886 = vmatpush.msk.msra.mxu2 %vm47_vm9, %v977_v55 }
 0x4ef   :  { %v609_v22 = vsel %vm608_vm12, %v938_v11, %v605_v20  ;;  %v36_v11 = vmul.u32 2, %v34_v8 }
 0x4f0   :  { %v614_v23 = vsel %vm611_vm13, %v613_v21, %v609_v22 }
 0x4f1   :  { %v615_v24 = vmul.f32 %v1073_v39, %v614_v23  ;;  %vm38_vm8 = vcmp.eq.s32.totalorder %v32_v9, %v36_v11  ;;  %v44_v14 = vadd.s32 1, %v36_v11 }
 0x4f3   :  { %880 = vmatmul.msk.f32.gmra.mxu0 %vm143_vm1, %v615_v24  ;;  %vm46_vm10 = vcmp.eq.s32.totalorder %v32_v9, %v44_v14 }
 0x4f4   :  { %887 = vmatpush.msk.msra.mxu2 %vm46_vm10, %v977_v55 }
 0x524   :  { %v1091_v25 = vpop.f32.mrf.mxu0 }
 0x52c   :  { %v648_v27 = vpop.f32.mrf.mxu0 }
 0x52d   :  { %881 = vmatmul.msk.f32.vlgmr.msra.gmra.mxu1 %vm86_vm0, %v648_v27 }
 0x534   :  { %v651_v28 = vpop.f32.mrf.mxu0 }
 0x535   :  { %882 = vmatmul.msk.f32.gmra.mxu1 %vm86_vm0, %v651_v28 }
 0x568   :  { %v654_v45 = vpop.f32.mrf.mxu0 }
 0x570   :  { %v657_v46 = vpop.f32.mrf.mxu0 }
 0x5aa   :  { %v683_v29 = vpop.f32.mrf.mxu1 }
 0x5ab   :  { %v689_v33 = vmul.f32 5.0, %v683_v29 }
 0x5ad   :  { %v691_v34 = vsel %vm143_vm1, %v689_v33, -inf }
 0x5b2   :  { %v686_v30 = vpop.f32.mrf.mxu1 }
 0x5b3   :  { %v690_v31 = vmul.f32 5.0, %v686_v30 }
 0x5b5   :  { %v694_v32 = vsel %vm143_vm1, %v690_v31, -inf }
 0x5b6   :  { %695 = vmax.xlane.f32.xlu0 %v694_v32 }
 0x5be   :  { %692 = vmax.xlane.f32.xlu0 %v691_v34 }
 0x629   :  { %v696_v35 = vpop.xlane.xlu0 %695 }
 0x62a   :  { %v698_v36 = vsub.f32 %v690_v31, %v696_v35 }
 0x62c   :  { %v701_v37 = vmul.f32 1.442695, %v698_v36 }
 0x62e   :  { %939 = vpow2.f32 %v701_v37 }
 0x631   :  { %v693_v38 = vpop.xlane.xlu0 %692 }
 0x632   :  { %v697_v39 = vsub.f32 %v689_v33, %v693_v38 }
 0x634   :  { %v940_v40 = vpop.eup %939  ;;  %v699_v41 = vmul.f32 1.442695, %v697_v39 }
 0x635   :  { %v706_v42 = vsel %vm143_vm1, %v940_v40, 0.0 }
 0x636   :  { %941 = vpow2.f32 %v699_v41  ;;  %707 = vadd.xlane.f32.xlu2 %v706_v42 }
 0x63c   :  { %v942_v43 = vpop.eup %941 }
 0x63d   :  { %v703_v44 = vsel %vm143_vm1, %v942_v43, 0.0 }
 0x63e   :  { %704 = vadd.xlane.f32.xlu0 %v703_v44 }
 0x667   :  { %739 = vxpose.xlu0.b32.start [1/2] (short) (narrow) %v654_v45, 8 }
 0x66f   :  { %740 = vxpose.xlu0.b32.end [2/2] (short) (narrow) %v657_v46, 8 }
 0x6a9   :  { %v708_v47 = vpop.xlane.xlu2 %707 }
 0x6aa   :  { %943 = vrcp.f32 %v708_v47  ;;  %v735_v51 = vand.u32 2147483648, %v708_v47  ;;  %v733_v53 = vand.u32 2147483647, %v708_v47  ;;  %vm729_vm14 = vweird.f32 %v708_v47 }
 0x6ac   :  { %v736_v57 = vor.u32 1.1754944e-38, %v735_v51  ;;  %vm734_vm2 = vcmp.eq.f32.partialorder %v733_v53, 8.507059e+37 }
 0x6b0   :  { %v944_v48 = vpop.eup %943 }
 0x6b1   :  { %v725_v49 = vmul.f32 %v944_v48, %v708_v47  ;;  %v705_v26 = vpop.xlane.xlu0 %704  ;;  %vm730_vm0 = vweird.f32 %v944_v48 }
 0x6b2   :  { %945 = vrcp.f32 %v705_v26  ;;  %vm731_vm15 = vmor %vm729_vm14, %vm730_vm0  ;;  %v720_v0 = vand.u32 2147483648, %v705_v26  ;;  %v718_v2 = vand.u32 2147483647, %v705_v26  ;;  %vm714_vm4 = vweird.f32 %v705_v26 }
 0x6b3   :  { %v726_v50 = vsub.f32 1.0, %v725_v49 }
 0x6b4   :  { %v721_v4 = vor.u32 1.1754944e-38, %v720_v0  ;;  %vm719_vm6 = vcmp.eq.f32.partialorder %v718_v2, 8.507059e+37 }
 0x6b5   :  { %v727_v52 = vmul.f32 %v944_v48, %v726_v50 }
 0x6b7   :  { %v728_v54 = vadd.f32 %v944_v48, %v727_v52 }
 0x6b8   :  { %v946_v56 = vpop.eup %945 }
 0x6b9   :  { %v732_v58 = vsel %vm731_vm15, %v944_v48, %v728_v54  ;;  %v710_v59 = vmul.f32 %v946_v56, %v705_v26  ;;  %vm715_vm3 = vweird.f32 %v946_v56 }
 0x6ba   :  { %v737_v61 = vsel %vm734_vm2, %v736_v57, %v732_v58  ;;  %vm716_vm5 = vmor %vm714_vm4, %vm715_vm3 }
 0x6bb   :  { %v738_v62 = vmul.f32 %v940_v40, %v737_v61  ;;  %v711_v63 = vsub.f32 1.0, %v710_v59 }
 0x6bd   :  { %v712_v1 = vmul.f32 %v946_v56, %v711_v63  ;;  %883 = vmatpush.xpose.msk.msra.mxu3 %vm143_vm1, %v738_v62 }
 0x6bf   :  { %v713_v3 = vadd.f32 %v946_v56, %v712_v1 }
 0x6c1   :  { %v717_v5 = vsel %vm716_vm5, %v946_v56, %v713_v3 }
 0x6c2   :  { %v722_v60 = vsel %vm719_vm6, %v721_v4, %v717_v5 }
 0x6c3   :  { %v723_v6 = vmul.f32 %v942_v43, %v722_v60 }
 0x6c5   :  { %884 = vmatpush.xpose.msk.msra.mxu3 %vm143_vm1, %v723_v6 }
 0x6c9   :  { %889 = vmatpush.msk.msrb.mxu3 %vm39_vm7, %v977_v55 }
 0x6cb   :  { %890 = vmatpush.msk.msrb.mxu3 %vm38_vm8, %v977_v55 }
 0x70b   :  { %v755_v15 = vpop.trf.xlu0 }
 0x70c   :  { %885 = vmatmul.msk.f32.vlgmr.msra.gmra.mxu3 %vm143_vm1, %v755_v15 }
 0x714   :  { %891 = vmatmul.msk.f32.vlgmr.msrb.gmra.mxu3 %vm143_vm1, %v1091_v25 }
 0x78f   :  { %v797_v16 = vpop.f32.mrf.mxu3 }
 0x790   :  { %888 = vmatmul.msk.f32.vlgmr.msra.gmra.mxu2 %vm143_vm1, %v797_v16 }
 0x797   :  { %v843_v17 = vpop.f32.mrf.mxu3 }
 0x813   :  { %v820_v18 = vpop.f32.mrf.mxu2 }
 0x814   :  { %v844_v19 = vadd.f32 %v843_v17, %v820_v18 }
 0x816   :  { %847 = vst.msk [vmem:[%s1111_s3] sm:$0xff] %vm846_vm11, %v844_v19 }
 0x817   :  { %852 = vsyncpa [#allocation3], 1 }

</bundles_post_ra>
